<compile_context>
chip_gen: v7x
topology: tpu7x:2x2x1
jax: 0.10.0
libtpu: 0.0.40
codegen_flags: <defaults>
</compile_context>

<pallas_src>
import math

import jax
import jax.numpy as jnp
from jax.experimental import pallas as pl
from jax.experimental.pallas import tpu as pltpu


def _round_up(x, m):
    return ((x + m - 1) // m) * m


def actor_kernel(x_ref, w1_ref, b1_ref, w2_ref, b2_ref,
                 w3_ref, b3_ref, w4_ref, b4_ref, o_ref):
    # fc1 + ReLU   (bf16 MXU inputs, f32 accumulate, f32 elementwise)
    h = jnp.dot(x_ref[...].astype(jnp.bfloat16), w1_ref[...],
                preferred_element_type=jnp.float32)
    h = jnp.maximum(h + b1_ref[...], 0.0)
    # fc2 + ReLU
    h = jnp.dot(h.astype(jnp.bfloat16), w2_ref[...],
                preferred_element_type=jnp.float32)
    h = jnp.maximum(h + b2_ref[...], 0.0)
    # fc3 + ReLU
    h = jnp.dot(h.astype(jnp.bfloat16), w3_ref[...],
                preferred_element_type=jnp.float32)
    h = jnp.maximum(h + b3_ref[...], 0.0)
    # fc4 + Tanh — narrow (action_dim-wide) store: masked vst cost is
    # negligible here and avoids 128-lane f32 HBM writeback.
    h = jnp.dot(h.astype(jnp.bfloat16), w4_ref[...],
                preferred_element_type=jnp.float32)
    o_ref[...] = jnp.tanh(h + b4_ref[...])


def actor_forward(x, params, *, tile_b=512):
    """x: (B, state_dim) float32 or bfloat16.  params: dict (bf16 W, f32 b).

    Returns (B, action_dim) float32 = tanh(fc4(relu(fc3(relu(fc2(relu(fc1(x))))))))
    """
    B, state_dim = x.shape
    action_dim = params["w4"].shape[1]

    # Batch tile: multiple of 8 sublanes, capped at tile_b.  When B is large
    # enough, cap TB so the grid has >=2 steps (megacore sharding on v7x).
    TB = min(tile_b, _round_up(max(B, 1), 8))
    if B > 16:
        TB = min(TB, _round_up(pl.cdiv(B, 2), 8))
    grid = (pl.cdiv(B, TB),)

    w1, b1 = params["w1"], params["b1"]
    w2, b2 = params["w2"], params["b2"]
    w3, b3 = params["w3"], params["b3"]
    w4, b4 = params["w4"], params["b4"]

    def resident(shape):
        # Whole array, same block every grid step -> DMA'd once, stays in VMEM.
        return pl.BlockSpec(shape, lambda i: tuple(0 for _ in shape))

    flops = 2 * B * (state_dim * 64 + 64 * 32 + 32 * 16 + 16 * action_dim)
    weight_bytes = sum(int(a.size) * a.dtype.itemsize
                       for a in (w1, b1, w2, b2, w3, b3, w4, b4))
    cost = pl.CostEstimate(
        flops=flops,
        transcendentals=B * action_dim,
        bytes_accessed=(B * state_dim * x.dtype.itemsize
                        + weight_bytes
                        + B * action_dim * 4),
    )

    out = pl.pallas_call(
        actor_kernel,
        out_shape=jax.ShapeDtypeStruct((B, action_dim), jnp.float32),
        grid=grid,
        in_specs=[
            pl.BlockSpec((TB, state_dim), lambda i: (i, 0)),
            resident(w1.shape), resident(b1.shape),
            resident(w2.shape), resident(b2.shape),
            resident(w3.shape), resident(b3.shape),
            resident(w4.shape), resident(b4.shape),
        ],
        out_specs=pl.BlockSpec((TB, action_dim), lambda i: (i, 0)),
        compiler_params=pltpu.CompilerParams(
            dimension_semantics=("parallel",)),
        cost_estimate=cost,
    )(x, w1, b1, w2, b2, w3, b3, w4, b4)

    return out


def init_actor_params(key, state_dim, action_dim):
    """Torch nn.Linear-style init (U[-1/sqrt(fan_in), 1/sqrt(fan_in)]).

    Weights stored bf16 in (in, out) layout; biases f32 in (1, out).
    """
    dims = [(state_dim, 64), (64, 32), (32, 16), (16, action_dim)]
    params = {}
    keys = jax.random.split(key, 2 * len(dims))
    for i, (fan_in, fan_out) in enumerate(dims):
        bound = 1.0 / math.sqrt(fan_in)
        w = jax.random.uniform(keys[2 * i], (fan_in, fan_out),
                               minval=-bound, maxval=bound, dtype=jnp.float32)
        b = jax.random.uniform(keys[2 * i + 1], (1, fan_out),
                               minval=-bound, maxval=bound, dtype=jnp.float32)
        params[f"w{i + 1}"] = w.astype(jnp.bfloat16)
        params[f"b{i + 1}"] = b  # biases stay f32
    return params


def reference_forward(x, params):
    """Pure-JAX reference using identical bf16-matmul / f32-accumulate math."""
    h = x
    for i in range(1, 4):
        h = jnp.dot(h.astype(jnp.bfloat16), params[f"w{i}"],
                    preferred_element_type=jnp.float32) + params[f"b{i}"]
        h = jnp.maximum(h, 0.0)
    h = jnp.dot(h.astype(jnp.bfloat16), params["w4"],
                preferred_element_type=jnp.float32) + params["b4"]
    return jnp.tanh(h)


if __name__ == "__main__":
    key = jax.random.PRNGKey(0)
    k_param, k_x = jax.random.split(key)

    batch = 2
    state_dim = 16          # e.g. a flattened (4, 4) observation
    action_dim = 4
    # action_bound is unused by the PyTorch forward() (tanh returned directly),
    # so it does not appear here either.

    params = init_actor_params(k_param, state_dim, action_dim)

    # nn.Flatten: build a (B, 4, 4) input and flatten to (B, state_dim) in glue.
    x_raw = jax.random.normal(k_x, (batch, 4, 4), dtype=jnp.float32)
    x = x_raw.reshape(batch, -1)

    out = actor_forward(x, params)
    out = jax.block_until_ready(out)

    ref = reference_forward(x, params)
    assert out.shape == (batch, action_dim)
    assert jnp.allclose(out, ref, atol=1e-4, rtol=1e-4), "mismatch vs reference"

    print("KERNEL_OK")
</pallas_src>

<mosaic_0001>
module attributes {stable_mosaic.version = 11 : i64} {
  func.func @actor_kernel(%arg0: i32, %arg1: memref<8x16xf32, #tpu.memory_space<vmem>>, %arg2: memref<16x64xbf16, #tpu.memory_space<vmem>>, %arg3: memref<1x64xf32, #tpu.memory_space<vmem>>, %arg4: memref<64x32xbf16, #tpu.memory_space<vmem>>, %arg5: memref<1x32xf32, #tpu.memory_space<vmem>>, %arg6: memref<32x16xbf16, #tpu.memory_space<vmem>>, %arg7: memref<1x16xf32, #tpu.memory_space<vmem>>, %arg8: memref<16x4xbf16, #tpu.memory_space<vmem>>, %arg9: memref<1x4xf32, #tpu.memory_space<vmem>>, %arg10: memref<8x4xf32, #tpu.memory_space<vmem>>) attributes {dimension_semantics = [#tpu.dimension_semantics<parallel>], iteration_bounds = array<i64: 1>, scalar_prefetch = 0 : i64, scratch_operands = 0 : i64, tpu.core_type = #tpu.core_type<tc>, window_params = [{transform_indices = @transform_0, window_bounds = array<i64: 8, 16>}, {pipeline_mode = #tpu.pipeline_mode<synchronous>, transform_indices = @transform_1, window_bounds = array<i64: 16, 64>}, {pipeline_mode = #tpu.pipeline_mode<synchronous>, transform_indices = @transform_2, window_bounds = array<i64: 1, 64>}, {pipeline_mode = #tpu.pipeline_mode<synchronous>, transform_indices = @transform_3, window_bounds = array<i64: 64, 32>}, {pipeline_mode = #tpu.pipeline_mode<synchronous>, transform_indices = @transform_4, window_bounds = array<i64: 1, 32>}, {pipeline_mode = #tpu.pipeline_mode<synchronous>, transform_indices = @transform_5, window_bounds = array<i64: 32, 16>}, {pipeline_mode = #tpu.pipeline_mode<synchronous>, transform_indices = @transform_6, window_bounds = array<i64: 1, 16>}, {pipeline_mode = #tpu.pipeline_mode<synchronous>, transform_indices = @transform_7, window_bounds = array<i64: 16, 4>}, {pipeline_mode = #tpu.pipeline_mode<synchronous>, transform_indices = @transform_8, window_bounds = array<i64: 1, 4>}, {transform_indices = @transform_9, window_bounds = array<i64: 8, 4>}]} {
    %c0 = arith.constant 0 : index
    %c0_0 = arith.constant 0 : index
    %0 = vector.load %arg1[%c0, %c0_0] : memref<8x16xf32, #tpu.memory_space<vmem>>, vector<8x16xf32>
    %1 = arith.truncf %0 : vector<8x16xf32> to vector<8x16xbf16>
    %c0_1 = arith.constant 0 : index
    %c0_2 = arith.constant 0 : index
    %2 = vector.load %arg2[%c0_1, %c0_2] : memref<16x64xbf16, #tpu.memory_space<vmem>>, vector<16x64xbf16>
    %cst = arith.constant dense<0.000000e+00> : vector<8x64xf32>
    %3 = tpu.matmul %1, %2, %cst {dimension_numbers = #tpu.dot_dimension_numbers<[1], [0], [0], [1], [0, 0, 1, 1], [], []>} : vector<8x16xbf16>, vector<16x64xbf16>, vector<8x64xf32> -> vector<8x64xf32>
    %c0_3 = arith.constant 0 : index
    %c0_4 = arith.constant 0 : index
    %4 = vector.load %arg3[%c0_3, %c0_4] : memref<1x64xf32, #tpu.memory_space<vmem>>, vector<1x64xf32>
    %5 = vector.broadcast %4 : vector<1x64xf32> to vector<8x64xf32>
    %6 = arith.addf %3, %5 : vector<8x64xf32>
    %cst_5 = arith.constant 0.000000e+00 : f32
    %7 = vector.broadcast %cst_5 : f32 to vector<8x64xf32>
    %8 = arith.maximumf %6, %7 : vector<8x64xf32>
    %9 = arith.truncf %8 : vector<8x64xf32> to vector<8x64xbf16>
    %c0_6 = arith.constant 0 : index
    %c0_7 = arith.constant 0 : index
    %10 = vector.load %arg4[%c0_6, %c0_7] : memref<64x32xbf16, #tpu.memory_space<vmem>>, vector<64x32xbf16>
    %cst_8 = arith.constant dense<0.000000e+00> : vector<8x32xf32>
    %11 = tpu.matmul %9, %10, %cst_8 {dimension_numbers = #tpu.dot_dimension_numbers<[1], [0], [0], [1], [0, 0, 1, 1], [], []>} : vector<8x64xbf16>, vector<64x32xbf16>, vector<8x32xf32> -> vector<8x32xf32>
    %c0_9 = arith.constant 0 : index
    %c0_10 = arith.constant 0 : index
    %12 = vector.load %arg5[%c0_9, %c0_10] : memref<1x32xf32, #tpu.memory_space<vmem>>, vector<1x32xf32>
    %13 = vector.broadcast %12 : vector<1x32xf32> to vector<8x32xf32>
    %14 = arith.addf %11, %13 : vector<8x32xf32>
    %cst_11 = arith.constant 0.000000e+00 : f32
    %15 = vector.broadcast %cst_11 : f32 to vector<8x32xf32>
    %16 = arith.maximumf %14, %15 : vector<8x32xf32>
    %17 = arith.truncf %16 : vector<8x32xf32> to vector<8x32xbf16>
    %c0_12 = arith.constant 0 : index
    %c0_13 = arith.constant 0 : index
    %18 = vector.load %arg6[%c0_12, %c0_13] : memref<32x16xbf16, #tpu.memory_space<vmem>>, vector<32x16xbf16>
    %cst_14 = arith.constant dense<0.000000e+00> : vector<8x16xf32>
    %19 = tpu.matmul %17, %18, %cst_14 {dimension_numbers = #tpu.dot_dimension_numbers<[1], [0], [0], [1], [0, 0, 1, 1], [], []>} : vector<8x32xbf16>, vector<32x16xbf16>, vector<8x16xf32> -> vector<8x16xf32>
    %c0_15 = arith.constant 0 : index
    %c0_16 = arith.constant 0 : index
    %20 = vector.load %arg7[%c0_15, %c0_16] : memref<1x16xf32, #tpu.memory_space<vmem>>, vector<1x16xf32>
    %21 = vector.broadcast %20 : vector<1x16xf32> to vector<8x16xf32>
    %22 = arith.addf %19, %21 : vector<8x16xf32>
    %cst_17 = arith.constant 0.000000e+00 : f32
    %23 = vector.broadcast %cst_17 : f32 to vector<8x16xf32>
    %24 = arith.maximumf %22, %23 : vector<8x16xf32>
    %25 = arith.truncf %24 : vector<8x16xf32> to vector<8x16xbf16>
    %c0_18 = arith.constant 0 : index
    %c0_19 = arith.constant 0 : index
    %26 = vector.load %arg8[%c0_18, %c0_19] : memref<16x4xbf16, #tpu.memory_space<vmem>>, vector<16x4xbf16>
    %cst_20 = arith.constant dense<0.000000e+00> : vector<8x4xf32>
    %27 = tpu.matmul %25, %26, %cst_20 {dimension_numbers = #tpu.dot_dimension_numbers<[1], [0], [0], [1], [0, 0, 1, 1], [], []>} : vector<8x16xbf16>, vector<16x4xbf16>, vector<8x4xf32> -> vector<8x4xf32>
    %c0_21 = arith.constant 0 : index
    %c0_22 = arith.constant 0 : index
    %28 = vector.load %arg9[%c0_21, %c0_22] : memref<1x4xf32, #tpu.memory_space<vmem>>, vector<1x4xf32>
    %29 = vector.broadcast %28 : vector<1x4xf32> to vector<8x4xf32>
    %30 = arith.addf %27, %29 : vector<8x4xf32>
    %31 = math.tanh %30 : vector<8x4xf32>
    %c0_23 = arith.constant 0 : index
    %c0_24 = arith.constant 0 : index
    %32 = vector.load %arg10[%c0_23, %c0_24] : memref<8x4xf32, #tpu.memory_space<vmem>>, vector<8x4xf32>
    tpu.vector_store %arg10[%c0_23, %c0_24], %31 {strides = array<i32>} : memref<8x4xf32, #tpu.memory_space<vmem>>, vector<8x4xf32>,
    return
  }
  func.func @transform_0(%arg0: i32) -> (i32, i32) {
    %c0_i32 = arith.constant 0 : i32
    %c0_i32_0 = arith.constant 0 : i32
    return %arg0, %c0_i32 : i32, i32
  }
  func.func @transform_1(%arg0: i32) -> (i32, i32) {
    %c0_i32 = arith.constant 0 : i32
    %c0_i32_0 = arith.constant 0 : i32
    %c0_i32_1 = arith.constant 0 : i32
    return %c0_i32, %c0_i32_0 : i32, i32
  }
  func.func @transform_2(%arg0: i32) -> (i32, i32) {
    %c0_i32 = arith.constant 0 : i32
    %c0_i32_0 = arith.constant 0 : i32
    %c0_i32_1 = arith.constant 0 : i32
    return %c0_i32, %c0_i32_0 : i32, i32
  }
  func.func @transform_3(%arg0: i32) -> (i32, i32) {
    %c0_i32 = arith.constant 0 : i32
    %c0_i32_0 = arith.constant 0 : i32
    %c0_i32_1 = arith.constant 0 : i32
    return %c0_i32, %c0_i32_0 : i32, i32
  }
  func.func @transform_4(%arg0: i32) -> (i32, i32) {
    %c0_i32 = arith.constant 0 : i32
    %c0_i32_0 = arith.constant 0 : i32
    %c0_i32_1 = arith.constant 0 : i32
    return %c0_i32, %c0_i32_0 : i32, i32
  }
  func.func @transform_5(%arg0: i32) -> (i32, i32) {
    %c0_i32 = arith.constant 0 : i32
    %c0_i32_0 = arith.constant 0 : i32
    %c0_i32_1 = arith.constant 0 : i32
    return %c0_i32, %c0_i32_0 : i32, i32
  }
  func.func @transform_6(%arg0: i32) -> (i32, i32) {
    %c0_i32 = arith.constant 0 : i32
    %c0_i32_0 = arith.constant 0 : i32
    %c0_i32_1 = arith.constant 0 : i32
    return %c0_i32, %c0_i32_0 : i32, i32
  }
  func.func @transform_7(%arg0: i32) -> (i32, i32) {
    %c0_i32 = arith.constant 0 : i32
    %c0_i32_0 = arith.constant 0 : i32
    %c0_i32_1 = arith.constant 0 : i32
    return %c0_i32, %c0_i32_0 : i32, i32
  }
  func.func @transform_8(%arg0: i32) -> (i32, i32) {
    %c0_i32 = arith.constant 0 : i32
    %c0_i32_0 = arith.constant 0 : i32
    %c0_i32_1 = arith.constant 0 : i32
    return %c0_i32, %c0_i32_0 : i32, i32
  }
  func.func @transform_9(%arg0: i32) -> (i32, i32) {
    %c0_i32 = arith.constant 0 : i32
    %c0_i32_0 = arith.constant 0 : i32
    return %arg0, %c0_i32 : i32, i32
  }
}

</mosaic_0001>

<bundles_post_ra>
// kernel: tpu_custom_call.1
= control target key start
LH: loop header
LB: loop body
LE: loop exit
PB: predicated region body
PF: predicated region fallthrough
CT: control target
= control target key end

     0   :  { %14 = vsyncpa [#allocation3], 0  ;;  %v427_v1 = vmov 0.0   ;;  %vm51_vm0 = vcmask 130048   ;;  %vm428_vm1 = vmmov 0   ;;  %vm136_vm2 = vcmask 523264   ;;  %s539_s0 = inlined_call_operand.vmem [shape: f32[2,16], index: 0, kind: input, shape index: {}]   ;;  %s540_s1 = inlined_call_operand.vmem [shape: bf16[16,64], index: 1, kind: input, shape index: {}]   ;;  %s541_s2 = inlined_call_operand.vmem [shape: f32[1,64], index: 2, kind: input, shape index: {}]   ;;  %s542_s3 = inlined_call_operand.vmem [shape: bf16[64,32], index: 3, kind: input, shape index: {}]   ;;  %s543_s4 = inlined_call_operand.vmem [shape: f32[1,32], index: 4, kind: input, shape index: {}]   ;;  %s544_s5 = inlined_call_operand.vmem [shape: bf16[32,16], index: 5, kind: input, shape index: {}]   ;;  %s545_s6 = inlined_call_operand.vmem [shape: f32[1,16], index: 6, kind: input, shape index: {}]   ;;  %s546_s7 = inlined_call_operand.vmem [shape: bf16[16,4], index: 7, kind: input, shape index: {}]   ;;  %s547_s8 = inlined_call_operand.vmem [shape: f32[1,4], index: 8, kind: input, shape index: {}]   ;;  %s548_s9 = inlined_call_operand.hbm [shape: f32[2,4], index: 9, kind: output, shape index: {}]  }
   0x1   :  { %v393_v0 = vld [vmem:[%s540_s1] sm:$0xff]   ;;  %356 = vmatprep.subr.bf16.mxu0 %v427_v1  ;;  %362 = vmatprep.subr.bf16.mxu1 %v427_v1  ;;  %v395_v5 = vld [vmem:[%s542_s3 + $0x8] sm:$0xff]   ;;  %v396_v6 = vld [vmem:[%s542_s3 + $0x10] sm:$0xff]   ;;  %vm205_vm3 = vcmask 261120   ;;  %vm310_vm4 = vcmask 31744  }
   0x2   :  { %v34_v2 = vld [vmem:[%s539_s0] sm:$0xff]  ;;  %357 = vmatpush3.bf16.msra.mxu0 %v393_v0  ;;  %358 = vmatprep.mubr.msk.bf16.mxu0 %vm428_vm1, %v427_v1  ;;  %v397_v7 = vld [vmem:[%s542_s3 + $0x18] sm:$0xff]   ;;  %v399_v17 = vld [vmem:[%s544_s5 + $0x8] sm:$0xff]  }
   0x3   :  { %v394_v3 = vld [vmem:[%s542_s3] sm:$0xff]   ;;  %v35_v4 = vpack.c.bf16 %v34_v2, %v34_v2  ;;  %370 = vmatprep.mubr.msk.bf16.mxu1 %vm428_vm1, %v427_v1  ;;  %374 = vmatprep.subr.bf16.mxu0 %v427_v1 }
   0x4   :  { %363 = vmatpush3.bf16.msra.mxu1 %v394_v3  ;;  %v398_v8 = vld [vmem:[%s544_s5] sm:$0xff]  }
   0x5   :  { %364 = vmatprep.subr.bf16.mxu1 %v427_v1  ;;  %359 = vmatmul.mubr.msk.bf16.vlgmr.msra.gmra.mrb[0].mxu0 %vm51_vm0, %v35_v4  ;;  %v328_v9 = vld [vmem:[%s541_s2] ss:$0 sm:$0xff] }
   0x6   :  { %378 = vmatprep.mubr.msk.bf16.mxu0 %vm428_vm1, %v427_v1  ;;  %375 = vmatpush3.bf16.msra.mxu0 %v398_v8  ;;  %v331_v18 = vld [vmem:[%s543_s4] ss:$0 sm:$0xff] }
   0x7   :  { %376 = vmatprep.subr.bf16.mxu0 %v427_v1  ;;  %v400_v25 = vld [vmem:[%s546_s7] sm:$0xff]  }
   0x8   :  { %365 = vmatpush3.bf16.msra.mxu1 %v395_v5  ;;  %v337_v27 = vld [vmem:[%s545_s6] ss:$0 sm:$0xff] }
   0x9   :  { %366 = vmatprep.subr.bf16.mxu1 %v427_v1  ;;  %v341_v35 = vld [vmem:[%s547_s8] ss:$0 sm:$0xff] }
   0xa   :  { %377 = vmatpush3.bf16.msra.mxu0 %v399_v17 }
   0xb   :  { %382 = vmatprep.subr.bf16.mxu0 %v427_v1 }
   0xc   :  { %367 = vmatpush3.bf16.msra.mxu1 %v396_v6 }
   0xd   :  { %368 = vmatprep.subr.bf16.mxu1 %v427_v1 }
  0x10   :  { %369 = vmatpush3.bf16.msra.mxu1 %v397_v7 }
  0xd8   :  { %v89_v10 = vpop.f32.mrb[0].mxu0 }
  0xd9   :  { %v90_v11 = vadd.f32 %v328_v9, %v89_v10  ;;  %v360_v12 = vpop.f32.mrb[1].mxu0 }
  0xda   :  { %v92_v13 = vpop.f32.mrb[2].mxu0 }
  0xdb   :  { %v95_v14 = vmax.f32 %v90_v11, 0.0  ;;  %v361_v15 = vpop.f32.mrb[3].mxu0 }
  0xdd   :  { %v96_v16 = vpack.c.bf16 %v95_v14, %v95_v14 }
  0xdf   :  { %371 = vmatmul.mubr.msk.bf16.vlgmr.msra.gmra.mrb[0].mxu1 %vm136_vm2, %v96_v16 }
 0x1b2   :  { %v174_v19 = vpop.f32.mrb[0].mxu1 }
 0x1b3   :  { %v175_v20 = vadd.f32 %v331_v18, %v174_v19  ;;  %v372_v21 = vpop.f32.mrb[1].mxu1 }
 0x1b4   :  { %v177_v22 = vpop.f32.mrb[2].mxu1 }
 0x1b5   :  { %v180_v23 = vmax.f32 %v175_v20, 0.0  ;;  %v373_v24 = vpop.f32.mrb[3].mxu1 }
 0x1b7   :  { %v181_v26 = vpack.c.bf16 %v180_v23, %v180_v23 }
 0x1b9   :  { %379 = vmatmul.mubr.msk.bf16.vlgmr.msra.gmra.mrb[4].mxu0 %vm205_vm3, %v181_v26 }
 0x1ba   :  { %383 = vmatpush3.bf16.msra.mxu0 %v400_v25  ;;  %384 = vmatprep.mubr.msk.bf16.mxu0 %vm428_vm1, %v427_v1 }
 0x28c   :  { %v243_v28 = vpop.f32.mrb[4].mxu0 }
 0x28d   :  { %v244_v29 = vadd.f32 %v337_v27, %v243_v28  ;;  %v380_v30 = vpop.f32.mrb[5].mxu0 }
 0x28e   :  { %v246_v31 = vpop.f32.mrb[6].mxu0 }
 0x28f   :  { %v249_v32 = vmax.f32 %v244_v29, 0.0  ;;  %v381_v33 = vpop.f32.mrb[7].mxu0 }
 0x291   :  { %v250_v34 = vpack.c.bf16 %v249_v32, %v249_v32 }
 0x293   :  { %385 = vmatmul.mubr.msk.bf16.vlgmr.msra.gmra.mrb[8].mxu0 %vm51_vm0, %v250_v34 }
 0x366   :  { %v303_v36 = vpop.f32.mrb[8].mxu0 }
 0x367   :  { %v304_v37 = vadd.f32 %v341_v35, %v303_v36  ;;  %v386_v38 = vpop.f32.mrb[9].mxu0 }
 0x368   :  { %v306_v39 = vpop.f32.mrb[10].mxu0 }
 0x369   :  { %401 = vtanh.f32 %v304_v37  ;;  %v387_v40 = vpop.f32.mrb[11].mxu0 }
 0x373   :  { %v402_v41 = vpop.eup %401 }
 0x374   :  { %311 = vst.msk [vmem:[#allocation2] sm:$0xff] %vm310_vm4, %v402_v41 }
 0x375   :  { %316 = vsyncadd [#allocation3], 96  ;;  %s429_s6 = smov [#allocation2]  }
 0x376   :  { %s317_s28 = sshll.u32 %s429_s6, 4  ;;  %s318_s28 = int_to_ptr.vmem [resolvable:$true] %s317_s28 }
 0x377   :  { %s403_s29 = scalar_lea.vmem %s318_s28, 32  ;;  %s407_s30 = scalar_lea.vmem %s318_s28, 128 }
 0x378   :  { %p404_p0 = scmp.ne.s32.totalorder %s318_s28, %s403_s29  ;;  %p408_p1 = scmp.lt.s32.totalorder %s318_s28, %s318_s28 }
 0x379   :  { %p409_p2 = scmp.lt.s32.totalorder %s407_s30, %s403_s29 }
 0x37b   :  { %p410_p3 = por %p409_p2, %p408_p1 }
 0x37d   :  { %p411_p4 = pnand %p410_p3, %p404_p0 }
 0x37f   :  { %414 = shalt.err (!%p411_p4)
}
 0x380   :  { %s415_s11 = scalar_lea.hbm %s548_s9, 32 }
 0x381   :  { %p416_p5 = scmp.ne.s32.totalorder %s548_s9, %s415_s11  ;;  %p419_p6 = scmp.lt.u32.totalorder %s415_s11, %s548_s9 }
 0x383   :  { %p421_p7 = pnand %p419_p6, %p416_p5 }
 0x385   :  { %424 = shalt.err (!%p421_p7)
}
 0x386   :  { %s430_s1 = smov 32   ;;  %s431_s0 = smov 2  }
 0x387   :  { %323 = dma.vmem_to_hbm [thread:$0]  %s318_s28, 32, %s548_s9, [#allocation3], %s430_s1, %s430_s1, %s431_s0  }
 0x388   :  { %425 = dma.done.wait [#allocation3], 128  }
 0x389   :  { %426 = vsyncadd [#allocation3], 4294967168 }
 0x38a   :  { %327 = vsyncpa [#allocation3], 1 }

</bundles_post_ra>
